<compile_context>
chip_gen: v7x
topology: tpu7x:2x2x1
jax: 0.10.0
libtpu: 0.0.40
codegen_flags: <defaults>
</compile_context>

<pallas_src>
import numpy as np
import jax
import jax.numpy as jnp
from jax.experimental import pallas as pl
from jax.experimental.pallas import tpu as pltpu


_MiB = 1024 * 1024
_SMALL_OUTPUT_BYPASS_BYTES = 1 * _MiB   # below this a plain XLA broadcast wins
_MIN_SPLIT_BLOCK_BYTES = 1 * _MiB       # don't split the grid below this/block


def _cdiv(a, b):
    return -(-a // b)


def _round_up(a, b):
    return _cdiv(a, b) * b


def _vmem_capacity_bytes():
    """Trace-time VMEM capacity query; conservative fallback if unavailable."""
    try:
        info = pltpu.get_tpu_info()
        cap = getattr(info, "vmem_capacity_bytes", None)
        if cap:
            return int(cap)
    except Exception:
        pass
    return 64 * _MiB   # v7x-sized fallback: safe block sizes on every generation


def _broadcast_kernel(src_ref, o_ref):
    # src_ref : (8, C)  f32 -- 8 identical sublanes, each = gb copies of M.flatten()
    # o_ref   : (TR, C) f32 -- output block; written as a pure vst stream in
    #                          full-vreg (8-sublane) chunks (no broadcast ops).
    src = src_ref[...]
    tr = o_ref.shape[0]
    n_full = tr // 8
    if n_full > 0:
        @pl.loop(0, n_full)
        def _(i):
            off = pl.multiple_of(i * 8, 8)
            o_ref[pl.ds(off, 8), :] = src
    rem = tr % 8          # only possible for a tiny full-extent block
    if rem:
        o_ref[pl.ds(n_full * 8, rem), :] = src[:rem, :]


def mass_fixed_forward(q, params, eps, m_dim, *, force_kernel=False):
    """JAX/Pallas equivalent of MassFixed.forward.

    q      : (bs, q_dim)  -- only bs = q.shape[0] is used
    params : (1,)         -- scalar parameter (diag = params * ones(m_dim))
    eps    : (m_dim,)
    returns: (bs, m_dim, m_dim)
    """
    bs = q.shape[0]
    off_diag_dim = m_dim * (m_dim - 1) // 2

    # ---- one-time construction of M (pure parameter glue, plain JAX) ----
    diag = params.astype(jnp.float32) * jnp.ones((m_dim,), dtype=jnp.float32)
    off_diag = jnp.zeros((off_diag_dim,), dtype=jnp.float32)
    L_flat = jnp.diag(diag).reshape(-1)
    if off_diag_dim > 0:
        ind = np.tril_indices(m_dim, k=-1)
        flat_ind = np.ravel_multi_index(ind, (m_dim, m_dim))
        L_flat = L_flat.at[jnp.asarray(flat_ind)].set(off_diag)
    L = L_flat.reshape(m_dim, m_dim)
    M0 = (
        jnp.matmul(L, L.T, precision=jax.lax.Precision.HIGHEST)
        + jnp.diag(eps.astype(jnp.float32))
    )  # (m_dim, m_dim), computed exactly once

    per_mat = m_dim * m_dim
    out_bytes = bs * per_mat * 4

    # ---- small-output bypass: pallas_call dispatch would dominate ----
    if not force_kernel and out_bytes < _SMALL_OUTPUT_BYPASS_BYTES:
        return jnp.broadcast_to(M0[None], (bs, m_dim, m_dim))

    # ---- lane-dense packing: gb matrices per row, C = gb*per_mat % 128 == 0 ----
    gb_base = 128 // int(np.gcd(per_mat, 128))
    groups_for_wide_row = max(1, 1024 // (gb_base * per_mat))
    groups_needed = _cdiv(bs, gb_base)
    gb_target = gb_base * min(groups_for_wide_row, groups_needed)
    # Prefer a gb that divides bs so we never pay the out[:bs] slice copy.
    gb = None
    g = gb_target
    while g >= gb_base:
        if bs % g == 0:
            gb = g
            break
        g -= gb_base
    if gb is None:
        gb = gb_target               # no divisor: pad the batch, slice at the end
    C = gb * per_mat                 # lane width, multiple of 128
    bs_pad = _round_up(bs, gb)
    n_rows = bs_pad // gb
    row_bytes = C * 4

    # ---- generation-aware block size ----
    vmem_cap = _vmem_capacity_bytes()
    target_block_bytes = min(16 * _MiB, max(4 * _MiB, vmem_cap // 8))
    tr = max(8, (target_block_bytes // row_bytes) // 8 * 8)

    # Prefer >=4 (else >=2) grid steps when each block stays >= 1 MiB, so v7x's
    # two TensorCores can split the store traffic and writeback of step i
    # overlaps the fill of step i+1.
    min_split_rows = max(8, _round_up(_cdiv(_MIN_SPLIT_BLOCK_BYTES, row_bytes), 8))
    for steps in (4, 2):
        cand = _round_up(_cdiv(n_rows, steps), 8)
        if cand >= min_split_rows and cand < n_rows:
            tr = min(tr, cand)
            break

    if tr >= n_rows:
        tr = n_rows                   # full-extent single block (always legal)
    elif n_rows % tr != 0:
        # Nudge tr to a divisor of n_rows so every step is an unmasked full
        # block; give up quickly rather than shrinking blocks too far.
        t = tr - 8
        lo = max(8, (tr * 3) // 4)
        while t >= lo:
            if n_rows % t == 0:
                tr = t
                break
            t -= 8
    grid = (_cdiv(n_rows, tr),)

    # Source: one full-vreg-height tile (8 sublanes x C lanes) of tiled M (tiny).
    m_src = jnp.tile(M0.reshape(1, per_mat), (8, gb))       # (8, C)

    # VMEM budget: double-buffered output + (tiny) input + headroom, clamped
    # under physical capacity.  Setting it explicitly keeps v5e (16 MiB default
    # scoped VMEM) from forcing smaller tiles.
    needed = 2 * tr * row_bytes + 2 * 8 * row_bytes + 2 * _MiB
    vmem_limit = max(needed, min(vmem_cap - 8 * _MiB, needed + 6 * _MiB))

    out2d = pl.pallas_call(
        _broadcast_kernel,
        out_shape=jax.ShapeDtypeStruct((n_rows, C), jnp.float32),
        grid_spec=pltpu.PrefetchScalarGridSpec(
            num_scalar_prefetch=0,
            grid=grid,
            in_specs=[pl.BlockSpec((8, C), lambda r: (0, 0))],
            out_specs=pl.BlockSpec((tr, C), lambda r: (r, 0)),
        ),
        compiler_params=pltpu.CompilerParams(
            # TODO(synk): on v7x, verify in a trace that "parallel" actually
            # shards this axis across both TensorCores; if not, switch to
            # pltpu.CORE_PARALLEL here.
            dimension_semantics=("parallel",),
            vmem_limit_bytes=int(vmem_limit),
        ),
        cost_estimate=pl.CostEstimate(
            flops=0,
            transcendentals=0,
            bytes_accessed=n_rows * row_bytes + 8 * row_bytes,
        ),
    )(m_src)

    out = out2d.reshape(bs_pad, m_dim, m_dim)
    if bs_pad != bs:
        out = out[:bs]
    return out


if __name__ == "__main__":
    m_dim = 4
    init_gain = 0.1

    key = jax.random.PRNGKey(0)
    k_eps, k_q = jax.random.split(key)

    # Matches MassFixed.__init__: a single scalar parameter, init_gain * ones(1).
    params = init_gain * jnp.ones((1,), dtype=jnp.float32)
    # eps must be indexable per diagonal element in the torch module.
    eps = 0.01 + 0.001 * jax.random.uniform(k_eps, (m_dim,), dtype=jnp.float32)

    # Reference M (mirrors the torch module) in numpy.
    diag_ref = float(params[0]) * np.ones(m_dim, dtype=np.float32)
    L_ref = np.diag(diag_ref)
    ind = np.tril_indices(m_dim, k=-1)
    flat_ind = np.ravel_multi_index(ind, (m_dim, m_dim))
    Lf = L_ref.reshape(-1).copy()
    Lf[flat_ind] = 0.0
    L_ref = Lf.reshape(m_dim, m_dim)
    M_ref1 = L_ref @ L_ref.T + np.diag(np.asarray(eps))

    # Three paths: (bs=2) small-output XLA bypass (the module's natural small
    # shape); (bs=4096) divisible, lane-dense Pallas kernel path; (bs=100)
    # padded / non-divisible Pallas path with a full-extent small block.
    for bs, force in ((2, False), (4096, True), (100, True)):
        q = jax.random.normal(k_q, (bs, m_dim), dtype=jnp.float32)
        M = mass_fixed_forward(q, params, eps, m_dim, force_kernel=force)
        M = jax.block_until_ready(M)
        assert M.shape == (bs, m_dim, m_dim)
        M_ref = np.broadcast_to(M_ref1[None], (bs, m_dim, m_dim))
        np.testing.assert_allclose(np.asarray(M), M_ref, rtol=1e-5, atol=1e-6)

    print("KERNEL_OK")
</pallas_src>

<mosaic_0001>
module attributes {stable_mosaic.version = 11 : i64} {
  func.func @_broadcast_kernel(%arg0: i32, %arg1: memref<8x1024xf32, #tpu.memory_space<vmem>>, %arg2: memref<64x1024xf32, #tpu.memory_space<vmem>>) attributes {dimension_semantics = [#tpu.dimension_semantics<parallel>], iteration_bounds = array<i64: 1>, scalar_prefetch = 0 : i64, scratch_operands = 0 : i64, tpu.core_type = #tpu.core_type<tc>, window_params = [{pipeline_mode = #tpu.pipeline_mode<synchronous>, transform_indices = @transform_0, window_bounds = array<i64: 8, 1024>}, {transform_indices = @transform_1, window_bounds = array<i64: 64, 1024>}]} {
    %c0 = arith.constant 0 : index
    %c0_0 = arith.constant 0 : index
    %0 = vector.load %arg1[%c0, %c0_0] : memref<8x1024xf32, #tpu.memory_space<vmem>>, vector<8x1024xf32>
    %c0_i32 = arith.constant 0 : i32
    %c8_i32 = arith.constant 8 : i32
    %1 = arith.addi %c0_i32, %c8_i32 : i32
    %c1_i32 = arith.constant 1 : i32
    scf.for %arg3 = %c0_i32 to %1 step %c1_i32  : i32 {
      %c1_i32_2 = arith.constant 1 : i32
      %2 = arith.muli %arg3, %c1_i32_2 : i32
      %c0_i32_3 = arith.constant 0 : i32
      %3 = arith.addi %c0_i32_3, %2 : i32
      %c8_i32_4 = arith.constant 8 : i32
      %4 = arith.muli %3, %c8_i32_4 : i32
      %5 = tpu.assume_multiple %4, 8 : i32
      %6 = arith.index_cast %5 : i32 to index
      %c0_5 = arith.constant 0 : index
      %7 = vector.load %arg2[%6, %c0_5] : memref<64x1024xf32, #tpu.memory_space<vmem>>, vector<8x1024xf32>
      tpu.vector_store %arg2[%6, %c0_5], %0 {strides = array<i32>} : memref<64x1024xf32, #tpu.memory_space<vmem>>, vector<8x1024xf32>,
    }
    %c8_i32_1 = arith.constant 8 : i32
    return
  }
  func.func @transform_0(%arg0: i32) -> (i32, i32) {
    %c0_i32 = arith.constant 0 : i32
    %c0_i32_0 = arith.constant 0 : i32
    %c0_i32_1 = arith.constant 0 : i32
    return %c0_i32, %c0_i32_0 : i32, i32
  }
  func.func @transform_1(%arg0: i32) -> (i32, i32) {
    %c0_i32 = arith.constant 0 : i32
    %c0_i32_0 = arith.constant 0 : i32
    return %arg0, %c0_i32 : i32, i32
  }
}

</mosaic_0001>

<bundles_post_ra>
// kernel: tpu_custom_call.1
= control target key start
LH: loop header
LB: loop body
LE: loop exit
PB: predicated region body
PF: predicated region fallthrough
CT: control target
= control target key end

     0   :  { %6 = vsyncpa [#allocation3], 0  ;;  %s183_s0 = inlined_call_operand.hbm [shape: f32[8,1024], index: 0, kind: input, shape index: {}]   ;;  %s184_s1 = inlined_call_operand.hbm [shape: f32[64,1024], index: 1, kind: output, shape index: {}]  }
   0x1   :  { %7 = vsyncpa [#allocation4], 0  ;;  %s145_s6 = smov [#allocation2]   ;;  %s89_s10 = scalar_lea.hbm %s183_s0, 1024 }
   0x2   :  { %s14_s7 = sshll.u32 %s145_s6, 4  ;;  %p90_p0 = scmp.ne.s32.totalorder %s183_s0, %s89_s10  ;;  %s15_s7 = int_to_ptr.vmem [resolvable:$true] %s14_s7 }
   0x3   :  { %p93_p1 = scmp.lt.u32.totalorder %s89_s10, %s183_s0 }
   0x5   :  { %p95_p2 = pnand %p93_p1, %p90_p0 }
   0x7   :  { %98 = shalt.err (!%p95_p2)
}
   0x8   :  { %s99_s15 = scalar_lea.vmem %s15_s7, 1024  ;;  %p104_p4 = scmp.lt.s32.totalorder %s15_s7, %s15_s7 }
   0x9   :  { %p100_p3 = scmp.ne.s32.totalorder %s15_s7, %s99_s15  ;;  %p105_p5 = scmp.lt.s32.totalorder %s99_s15, %s99_s15 }
   0xb   :  { %p106_p6 = por %p105_p5, %p104_p4 }
   0xd   :  { %p107_p7 = pnand %p106_p6, %p100_p3 }
   0xf   :  { %110 = shalt.err (!%p107_p7)
}
  0x10   :  { %17 = dma.hbm_to_vmem [thread:$0]  %s183_s0, 1024, %s15_s7, [#allocation3]  }
  0x11   :  { %137 = dma.done.wait [#allocation3], 1024  }
  0x12   :  { %138 = vsyncadd [#allocation3], 4294966272  ;;  %v21_v0 = vld [vmem:[#allocation2] sm:$0xff]  ;;  %v22_v1 = vld [vmem:[#allocation2 + $0x8] sm:$0xff]  ;;  %s141_s18 = smov 0  }
  0x13   :  { %v23_v2 = vld [vmem:[#allocation2 + $0x10] sm:$0xff]  ;;  %v24_v3 = vld [vmem:[#allocation2 + $0x18] sm:$0xff]  ;;  %v25_v4 = vld [vmem:[#allocation2 + $0x20] sm:$0xff] }
  0x14   :  { %v26_v5 = vld [vmem:[#allocation2 + $0x28] sm:$0xff]  ;;  %v27_v6 = vld [vmem:[#allocation2 + $0x30] sm:$0xff]  ;;  %v28_v7 = vld [vmem:[#allocation2 + $0x38] sm:$0xff] }
  0x15 LB: > { %s73_s19 = sshll.u32 %s143_s18, 3  ;;  %s34_s18 = sadd.s32 1, %s143_s18   ;;  %s143_s18 = sphi %s141_s18, %s34_s18  }
  0x16   : > { %s36_s20 = sshra.s32 %s73_s19, 3  ;;  %p31_p8 = scmp.ge.s32.totalorder %s34_s18, 8  }
  0x17   : > { %s76_s21 = sshll.u32 %s36_s20, 6  ;;  %s146_s0 = smov (%p31_p8), [#allocation5]  }
  0x18   : > { %s40_s22 = scalar_lea.vmem [#allocation5], %s76_s21  ;;  %33 = sbr.rel (!%p31_p8) target bundleno = 21 (0x15), region = 36 }
  0x19   : > { %41 = vst [vmem:[%s40_s22] sm:$0xff] %v21_v0  ;;  %42 = vst [vmem:[%s40_s22 + $0x8] sm:$0xff] %v22_v1  ;;  %s54_s23 = sshll.u32 (%p31_p8), %s146_s0, 4  ;;  %s55_s23 = int_to_ptr.vmem [resolvable:$true] %s54_s23 }
  0x1a   : > { %43 = vst [vmem:[%s40_s22 + $0x10] sm:$0xff] %v23_v2  ;;  %44 = vst [vmem:[%s40_s22 + $0x18] sm:$0xff] %v24_v3  ;;  %s111_s24 = scalar_lea.vmem (%p31_p8), %s55_s23, 8192  ;;  %p116_p10 = scmp.lt.s32.totalorder (%p31_p8), %s55_s23, %s55_s23 }
  0x1b   : > { %45 = vst [vmem:[%s40_s22 + $0x20] sm:$0xff] %v25_v4  ;;  %46 = vst [vmem:[%s40_s22 + $0x28] sm:$0xff] %v26_v5  ;;  %p112_p9 = scmp.ne.s32.totalorder (%p31_p8), %s55_s23, %s111_s24  ;;  %p117_p11 = scmp.lt.s32.totalorder (%p31_p8), %s111_s24, %s111_s24 }
  0x1c   : > { %47 = vst [vmem:[%s40_s22 + $0x30] sm:$0xff] %v27_v6  ;;  %48 = vst [vmem:[%s40_s22 + $0x38] sm:$0xff] %v28_v7 }
  0x1d   :  { %p118_p12 = por (%p31_p8), %p117_p11, %p116_p10 }
  0x1f   :  { %p119_p13 = pnand %p118_p12, %p112_p9 }
  0x21   :  { %122 = shalt.err (!%p119_p13)
}
  0x22   :  { %s123_s27 = scalar_lea.hbm %s184_s1, 8192 }
  0x23   :  { %p124_p0 = scmp.ne.s32.totalorder %s184_s1, %s123_s27  ;;  %p127_p1 = scmp.lt.u32.totalorder %s123_s27, %s184_s1 }
  0x25   :  { %p129_p2 = pnand %p127_p1, %p124_p0 }
  0x27   :  { %132 = shalt.err (!%p129_p2)
}
  0x28   :  { %s147_s3 = smov 1024   ;;  %s148_s4 = smov 64  }
  0x29   :  { %60 = dma.vmem_to_hbm [thread:$0]  %s55_s23, 8192, %s184_s1, [#allocation4], %s147_s3, %s147_s3, %s148_s4  }
  0x2a   :  { %139 = dma.done.wait [#allocation4], 8192  }
  0x2b   :  { %140 = vsyncadd [#allocation4], 4294959104 }
  0x2c   :  { %64 = vsyncpa [#allocation3], 1 }
  0x2d   :  { %65 = vsyncpa [#allocation4], 1 }

</bundles_post_ra>
